<compile_context>
chip_gen: v7x
topology: tpu7x:2x2x1
jax: 0.10.0
libtpu: 0.0.40
codegen_flags: <defaults>
</compile_context>

<pallas_src>
import numpy as np
import jax
import jax.numpy as jnp
from jax.experimental import pallas as pl
from jax.experimental.pallas import tpu as pltpu


def attn_decoder_kernel(
    emb_ref, h0_ref, enc_ref,       # activations: (bs,H), (bs,H), (bs,H,L)
    wattn_ref,                      # (2H, L): rows [0:H] act on embedded, [H:2H] on hidden[0]
    wcomb_ref,                      # (2H, H): rows [0:H] embedded, [H:2H] attn_applied
    wgru_ref,                       # (2H, 3H): rows [0:H]=W_ih, [H:2H]=W_hh (gates r,z,n)
    wout_ref,                       # (H, V)
    b_ref,                          # (8, BW) packed biases (lane-dense)
    out_ref, hid_ref, aw_ref,
):
    bs, H = emb_ref.shape
    L = wattn_ref.shape[1]
    V = wout_ref.shape[1]

    emb = emb_ref[...]              # (bs, H)
    h0 = h0_ref[...]                # (bs, H)

    b = b_ref[...]                  # (8, BW)
    battn = b[0:1, :L]
    bcomb = b[1:2, :H]
    b_ih = b[2:3, :3 * H]
    b_hh = b[3:4, :3 * H]
    bout = b[4:5, :V]

    # ---- attention weights: softmax(Linear(cat(embedded, hidden[0]))) ----
    # cat(a,b) @ W  ==  a @ W[:H] + b @ W[H:]   (split form avoids the lane concat)
    wa = wattn_ref[...]                                                 # (2H, L)
    logits = (jnp.dot(emb, wa[:H, :], preferred_element_type=jnp.float32)
              + jnp.dot(h0, wa[H:, :], preferred_element_type=jnp.float32)
              + battn)                                                  # (bs, L)
    m = jnp.max(logits, axis=-1, keepdims=True)
    e = jnp.exp(logits - m)
    aw = e * pl.reciprocal(jnp.sum(e, axis=-1, keepdims=True))          # exact recip
    aw_ref[...] = aw

    # ---- attn_applied = bmm(aw.unsqueeze(1), enc^T) on the MXU ----
    # enc is (bs, H, L); contract over the lane axis L (no wrapper transpose needed).
    attn_applied = jnp.einsum(
        "bol,bhl->boh", aw.reshape(bs, 1, L), enc_ref[...],
        preferred_element_type=jnp.float32).reshape(bs, H)              # (bs, H)

    # ---- output = relu(attn_combine(cat(embedded, attn_applied))) ----
    wc = wcomb_ref[...]                                                 # (2H, H)
    x = (jnp.dot(emb, wc[:H, :], preferred_element_type=jnp.float32)
         + jnp.dot(attn_applied, wc[H:, :], preferred_element_type=jnp.float32)
         + bcomb)
    x = jnp.maximum(x, 0.0)                                             # (bs, H)

    # ---- GRU cell, fused gate matmuls (PyTorch gate order r, z, n) ----
    wg = wgru_ref[...]                                                  # (2H, 3H)
    gi = jnp.dot(x, wg[:H, :], preferred_element_type=jnp.float32) + b_ih    # (bs, 3H)
    gh = jnp.dot(h0, wg[H:, :], preferred_element_type=jnp.float32) + b_hh   # (bs, 3H)

    r = jax.nn.sigmoid(gi[:, 0:H] + gh[:, 0:H])
    z = jax.nn.sigmoid(gi[:, H:2 * H] + gh[:, H:2 * H])
    n = jnp.tanh(gi[:, 2 * H:3 * H] + r * gh[:, 2 * H:3 * H])
    h_new = (1.0 - z) * n + z * h0                                      # (bs, H)
    hid_ref[...] = h_new

    # ---- output projection ----
    out_ref[...] = jnp.dot(h_new, wout_ref[...],
                           preferred_element_type=jnp.float32) + bout


def attn_decoder_cell(input_ids, hidden, encoder_outputs, packed):
    """Mirrors AttnDecoderRNN_Cell.forward (eval mode).

    input_ids:        (bs,) int32 token ids
    hidden:           (1, bs, H) float32 GRU hidden state
    encoder_outputs:  (bs, C=H, h, w) float32, with h*w == max_length
    Returns (output (bs, V), hidden (1, bs, H), attn_weights (bs, L)).
    """
    bs, c, h, w = encoder_outputs.shape
    T = h * w
    H = packed["wcomb"].shape[1]
    L = packed["wattn"].shape[1]
    V = packed["wout"].shape[1]
    assert T == L and c == H

    # glue: embedding gather (data-dependent) + eval-mode dropout (identity)
    embedded = jnp.take(packed["embedding"], input_ids, axis=0)     # (bs, H)
    # TODO(synk): training-mode dropout not implemented (eval mode -> identity).
    h0 = hidden[0]                                                  # (bs, H)
    # free reshape only (collapses trailing dims); NO transpose / extra HBM pass
    enc = encoder_outputs.reshape(bs, c, T)                         # (bs, H, L)

    vmem = pl.BlockSpec(memory_space=pltpu.MemorySpace.VMEM)
    kernel_inputs = (
        embedded, h0, enc,
        packed["wattn"], packed["wcomb"], packed["wgru"], packed["wout"],
        packed["bpack"],
    )

    out, h_new, aw = pl.pallas_call(
        attn_decoder_kernel,
        out_shape=(
            jax.ShapeDtypeStruct((bs, V), jnp.float32),
            jax.ShapeDtypeStruct((bs, H), jnp.float32),
            jax.ShapeDtypeStruct((bs, L), jnp.float32),
        ),
        in_specs=[vmem] * len(kernel_inputs),
        out_specs=(vmem, vmem, vmem),
    )(*kernel_inputs)

    return out, h_new[None, :, :], aw


def make_params(key, hidden_size, output_size, max_length):
    """Logical (unpacked) parameters, layout (in_features, out_features)."""
    H, V, L = hidden_size, output_size, max_length
    ks = jax.random.split(key, 12)
    s = 0.1
    return {
        "embedding": jax.random.normal(ks[0], (V, H), jnp.float32) * s,
        # attn: Linear(2H -> L); rows [0:H] act on embedded, [H:2H] on hidden[0]
        "wattn": jax.random.normal(ks[1], (2 * H, L), jnp.float32) * s,
        "battn": jax.random.normal(ks[2], (1, L), jnp.float32) * s,
        # attn_combine: Linear(2H -> H); rows [0:H] embedded, [H:2H] attn_applied
        "wcomb": jax.random.normal(ks[3], (2 * H, H), jnp.float32) * s,
        "bcomb": jax.random.normal(ks[4], (1, H), jnp.float32) * s,
        # GRU (single layer), gates concatenated along lanes in order r, z, n
        "wih": jax.random.normal(ks[5], (H, 3 * H), jnp.float32) * s,
        "whh": jax.random.normal(ks[6], (H, 3 * H), jnp.float32) * s,
        "bih": jax.random.normal(ks[7], (1, 3 * H), jnp.float32) * s,
        "bhh": jax.random.normal(ks[8], (1, 3 * H), jnp.float32) * s,
        # out: Linear(H -> V)
        "wout": jax.random.normal(ks[9], (H, V), jnp.float32) * s,
        "bout": jax.random.normal(ks[10], (1, V), jnp.float32) * s,
    }


def pack_params(p, hidden_size):
    """Pack logical params into the 8-input kernel layout (fewer, lane-dense DMAs)."""
    H = hidden_size
    L = p["battn"].shape[1]
    V = p["bout"].shape[1]
    BW = int(np.ceil(max(L, H, 3 * H, V, 1) / 128.0) * 128)   # lane-dense bias slab
    bpack = np.zeros((8, BW), np.float32)
    bpack[0, :L] = np.asarray(p["battn"])[0]
    bpack[1, :H] = np.asarray(p["bcomb"])[0]
    bpack[2, :3 * H] = np.asarray(p["bih"])[0]
    bpack[3, :3 * H] = np.asarray(p["bhh"])[0]
    bpack[4, :V] = np.asarray(p["bout"])[0]
    return {
        "embedding": p["embedding"],
        "wattn": p["wattn"],
        "wcomb": p["wcomb"],
        "wgru": jnp.concatenate([p["wih"], p["whh"]], axis=0),   # (2H, 3H)
        "wout": p["wout"],
        "bpack": jnp.asarray(bpack),
    }


def reference_forward(input_ids, hidden, encoder_outputs, p):
    """Pure-JAX reference matching the PyTorch forward (eval mode), unpacked params."""
    bs, c, h, w = encoder_outputs.shape
    H = c
    T = h * w
    emb = jnp.take(p["embedding"], input_ids, axis=0)
    h0 = hidden[0]
    enc = jnp.transpose(encoder_outputs.reshape(bs, c, T), (0, 2, 1))   # (bs, T, H)
    logits = jnp.concatenate([emb, h0], -1) @ p["wattn"] + p["battn"]
    aw = jax.nn.softmax(logits, axis=1)
    attn_applied = jnp.einsum("bl,blh->bh", aw, enc)
    x = jax.nn.relu(jnp.concatenate([emb, attn_applied], -1) @ p["wcomb"] + p["bcomb"])
    gi = x @ p["wih"] + p["bih"]
    gh = h0 @ p["whh"] + p["bhh"]
    r = jax.nn.sigmoid(gi[:, 0:H] + gh[:, 0:H])
    z = jax.nn.sigmoid(gi[:, H:2 * H] + gh[:, H:2 * H])
    n = jnp.tanh(gi[:, 2 * H:] + r * gh[:, 2 * H:])
    h_new = (1.0 - z) * n + z * h0
    out = h_new @ p["wout"] + p["bout"]
    return out, h_new[None], aw


if __name__ == "__main__":
    hidden_size = 32
    output_size = 40          # vocab size
    max_length = 64           # must equal h*w of encoder_outputs
    bs = 2
    eh_sp, ew_sp = 8, 8       # 8*8 == max_length

    key = jax.random.PRNGKey(0)
    kp, ki, kh, ke = jax.random.split(key, 4)

    logical = make_params(kp, hidden_size, output_size, max_length)
    packed = pack_params(logical, hidden_size)

    input_ids = jax.random.randint(ki, (bs,), 0, output_size, dtype=jnp.int32)
    hidden = jax.random.normal(kh, (1, bs, hidden_size), jnp.float32)
    encoder_outputs = jax.random.normal(ke, (bs, hidden_size, eh_sp, ew_sp), jnp.float32)

    out, h_new, aw = attn_decoder_cell(input_ids, hidden, encoder_outputs, packed)
    out, h_new, aw = jax.block_until_ready((out, h_new, aw))

    # correctness check against pure-JAX reference (unpacked params)
    ro, rh, ra = reference_forward(input_ids, hidden, encoder_outputs, logical)
    np.testing.assert_allclose(np.asarray(out), np.asarray(ro), rtol=1e-5, atol=1e-5)
    np.testing.assert_allclose(np.asarray(h_new), np.asarray(rh), rtol=1e-5, atol=1e-5)
    np.testing.assert_allclose(np.asarray(aw), np.asarray(ra), rtol=1e-5, atol=1e-5)

    print("KERNEL_OK")
</pallas_src>

<mosaic_0001>
module attributes {stable_mosaic.version = 11 : i64} {
  func.func @attn_decoder_kernel(%arg0: memref<2x32xf32, #tpu.memory_space<vmem>>, %arg1: memref<2x32xf32, #tpu.memory_space<vmem>>, %arg2: memref<2x32x64xf32, #tpu.memory_space<vmem>>, %arg3: memref<64x64xf32, #tpu.memory_space<vmem>>, %arg4: memref<64x32xf32, #tpu.memory_space<vmem>>, %arg5: memref<64x96xf32, #tpu.memory_space<vmem>>, %arg6: memref<32x40xf32, #tpu.memory_space<vmem>>, %arg7: memref<8x128xf32, #tpu.memory_space<vmem>>, %arg8: memref<2x40xf32, #tpu.memory_space<vmem>>, %arg9: memref<2x32xf32, #tpu.memory_space<vmem>>, %arg10: memref<2x64xf32, #tpu.memory_space<vmem>>) attributes {dimension_semantics = [], scalar_prefetch = 0 : i64, scratch_operands = 0 : i64, tpu.core_type = #tpu.core_type<tc>} {
    %c0 = arith.constant 0 : index
    %c0_0 = arith.constant 0 : index
    %0 = vector.load %arg0[%c0, %c0_0] : memref<2x32xf32, #tpu.memory_space<vmem>>, vector<2x32xf32>
    %c0_1 = arith.constant 0 : index
    %c0_2 = arith.constant 0 : index
    %1 = vector.load %arg1[%c0_1, %c0_2] : memref<2x32xf32, #tpu.memory_space<vmem>>, vector<2x32xf32>
    %c0_3 = arith.constant 0 : index
    %c0_4 = arith.constant 0 : index
    %2 = vector.load %arg7[%c0_3, %c0_4] : memref<8x128xf32, #tpu.memory_space<vmem>>, vector<8x128xf32>
    %3 = vector.extract_strided_slice %2 {offsets = [0, 0], sizes = [1, 64], strides = [1, 1]} : vector<8x128xf32> to vector<1x64xf32>
    %4 = vector.extract_strided_slice %2 {offsets = [1, 0], sizes = [1, 32], strides = [1, 1]} : vector<8x128xf32> to vector<1x32xf32>
    %5 = vector.extract_strided_slice %2 {offsets = [2, 0], sizes = [1, 96], strides = [1, 1]} : vector<8x128xf32> to vector<1x96xf32>
    %6 = vector.extract_strided_slice %2 {offsets = [3, 0], sizes = [1, 96], strides = [1, 1]} : vector<8x128xf32> to vector<1x96xf32>
    %7 = vector.extract_strided_slice %2 {offsets = [4, 0], sizes = [1, 40], strides = [1, 1]} : vector<8x128xf32> to vector<1x40xf32>
    %c0_5 = arith.constant 0 : index
    %c0_6 = arith.constant 0 : index
    %8 = vector.load %arg3[%c0_5, %c0_6] : memref<64x64xf32, #tpu.memory_space<vmem>>, vector<64x64xf32>
    %9 = vector.extract_strided_slice %8 {offsets = [0, 0], sizes = [32, 64], strides = [1, 1]} : vector<64x64xf32> to vector<32x64xf32>
    %cst = arith.constant dense<0.000000e+00> : vector<2x64xf32>
    %10 = tpu.matmul %0, %9, %cst {dimension_numbers = #tpu.dot_dimension_numbers<[1], [0], [0], [1], [0, 0, 1, 1], [], []>} : vector<2x32xf32>, vector<32x64xf32>, vector<2x64xf32> -> vector<2x64xf32>
    %11 = vector.extract_strided_slice %8 {offsets = [32, 0], sizes = [32, 64], strides = [1, 1]} : vector<64x64xf32> to vector<32x64xf32>
    %cst_7 = arith.constant dense<0.000000e+00> : vector<2x64xf32>
    %12 = tpu.matmul %1, %11, %cst_7 {dimension_numbers = #tpu.dot_dimension_numbers<[1], [0], [0], [1], [0, 0, 1, 1], [], []>} : vector<2x32xf32>, vector<32x64xf32>, vector<2x64xf32> -> vector<2x64xf32>
    %13 = arith.addf %10, %12 : vector<2x64xf32>
    %14 = vector.broadcast %3 : vector<1x64xf32> to vector<2x64xf32>
    %15 = arith.addf %13, %14 : vector<2x64xf32>
    %cst_8 = arith.constant dense<0xFF800000> : vector<2xf32>
    %16 = vector.multi_reduction <maximumf>, %15, %cst_8 [1] : vector<2x64xf32> to vector<2xf32>
    %17 = vector.shape_cast %16 : vector<2xf32> to vector<2x1xf32>
    %18 = vector.broadcast %17 : vector<2x1xf32> to vector<2x64xf32>
    %19 = arith.subf %15, %18 : vector<2x64xf32>
    %20 = math.exp %19 : vector<2x64xf32>
    %cst_9 = arith.constant dense<0.000000e+00> : vector<2xf32>
    %21 = vector.multi_reduction <add>, %20, %cst_9 [1] : vector<2x64xf32> to vector<2xf32>
    %22 = vector.shape_cast %21 : vector<2xf32> to vector<2x1xf32>
    %23 = tpu.reciprocal %22 : vector<2x1xf32> -> vector<2x1xf32>
    %24 = vector.broadcast %23 : vector<2x1xf32> to vector<2x64xf32>
    %25 = arith.mulf %20, %24 : vector<2x64xf32>
    %c0_10 = arith.constant 0 : index
    %c0_11 = arith.constant 0 : index
    %26 = vector.load %arg10[%c0_10, %c0_11] : memref<2x64xf32, #tpu.memory_space<vmem>>, vector<2x64xf32>
    tpu.vector_store %arg10[%c0_10, %c0_11], %25 {strides = array<i32>} : memref<2x64xf32, #tpu.memory_space<vmem>>, vector<2x64xf32>,
    %27 = vector.shape_cast %25 : vector<2x64xf32> to vector<2x1x64xf32>
    %c0_12 = arith.constant 0 : index
    %c0_13 = arith.constant 0 : index
    %c0_14 = arith.constant 0 : index
    %28 = vector.load %arg2[%c0_12, %c0_13, %c0_14] : memref<2x32x64xf32, #tpu.memory_space<vmem>>, vector<2x32x64xf32>
    "tpu.trace_start"() <{level = 10 : i32, message = "bol,bhl->boh"}> : () -> ()
    %cst_15 = arith.constant dense<0.000000e+00> : vector<2x1x32xf32>
    %29 = tpu.matmul %27, %28, %cst_15 {dimension_numbers = #tpu.dot_dimension_numbers<[2], [2], [1], [1], [0, 0, 0, 1, 1, 1], [0], [0]>} : vector<2x1x64xf32>, vector<2x32x64xf32>, vector<2x1x32xf32> -> vector<2x1x32xf32>
    "tpu.trace_stop"() : () -> ()
    %30 = vector.shape_cast %29 : vector<2x1x32xf32> to vector<2x32xf32>
    %c0_16 = arith.constant 0 : index
    %c0_17 = arith.constant 0 : index
    %31 = vector.load %arg4[%c0_16, %c0_17] : memref<64x32xf32, #tpu.memory_space<vmem>>, vector<64x32xf32>
    %32 = vector.extract_strided_slice %31 {offsets = [0, 0], sizes = [32, 32], strides = [1, 1]} : vector<64x32xf32> to vector<32x32xf32>
    %cst_18 = arith.constant dense<0.000000e+00> : vector<2x32xf32>
    %33 = tpu.matmul %0, %32, %cst_18 {dimension_numbers = #tpu.dot_dimension_numbers<[1], [0], [0], [1], [0, 0, 1, 1], [], []>} : vector<2x32xf32>, vector<32x32xf32>, vector<2x32xf32> -> vector<2x32xf32>
    %34 = vector.extract_strided_slice %31 {offsets = [32, 0], sizes = [32, 32], strides = [1, 1]} : vector<64x32xf32> to vector<32x32xf32>
    %cst_19 = arith.constant dense<0.000000e+00> : vector<2x32xf32>
    %35 = tpu.matmul %30, %34, %cst_19 {dimension_numbers = #tpu.dot_dimension_numbers<[1], [0], [0], [1], [0, 0, 1, 1], [], []>} : vector<2x32xf32>, vector<32x32xf32>, vector<2x32xf32> -> vector<2x32xf32>
    %36 = arith.addf %33, %35 : vector<2x32xf32>
    %37 = vector.broadcast %4 : vector<1x32xf32> to vector<2x32xf32>
    %38 = arith.addf %36, %37 : vector<2x32xf32>
    %cst_20 = arith.constant 0.000000e+00 : f32
    %39 = vector.broadcast %cst_20 : f32 to vector<2x32xf32>
    %40 = arith.maximumf %38, %39 : vector<2x32xf32>
    %c0_21 = arith.constant 0 : index
    %c0_22 = arith.constant 0 : index
    %41 = vector.load %arg5[%c0_21, %c0_22] : memref<64x96xf32, #tpu.memory_space<vmem>>, vector<64x96xf32>
    %42 = vector.extract_strided_slice %41 {offsets = [0, 0], sizes = [32, 96], strides = [1, 1]} : vector<64x96xf32> to vector<32x96xf32>
    %cst_23 = arith.constant dense<0.000000e+00> : vector<2x96xf32>
    %43 = tpu.matmul %40, %42, %cst_23 {dimension_numbers = #tpu.dot_dimension_numbers<[1], [0], [0], [1], [0, 0, 1, 1], [], []>} : vector<2x32xf32>, vector<32x96xf32>, vector<2x96xf32> -> vector<2x96xf32>
    %44 = vector.broadcast %5 : vector<1x96xf32> to vector<2x96xf32>
    %45 = arith.addf %43, %44 : vector<2x96xf32>
    %46 = vector.extract_strided_slice %41 {offsets = [32, 0], sizes = [32, 96], strides = [1, 1]} : vector<64x96xf32> to vector<32x96xf32>
    %cst_24 = arith.constant dense<0.000000e+00> : vector<2x96xf32>
    %47 = tpu.matmul %1, %46, %cst_24 {dimension_numbers = #tpu.dot_dimension_numbers<[1], [0], [0], [1], [0, 0, 1, 1], [], []>} : vector<2x32xf32>, vector<32x96xf32>, vector<2x96xf32> -> vector<2x96xf32>
    %48 = vector.broadcast %6 : vector<1x96xf32> to vector<2x96xf32>
    %49 = arith.addf %47, %48 : vector<2x96xf32>
    %50 = vector.extract_strided_slice %45 {offsets = [0, 0], sizes = [2, 32], strides = [1, 1]} : vector<2x96xf32> to vector<2x32xf32>
    %51 = vector.extract_strided_slice %49 {offsets = [0, 0], sizes = [2, 32], strides = [1, 1]} : vector<2x96xf32> to vector<2x32xf32>
    %52 = arith.addf %50, %51 : vector<2x32xf32>
    %53 = arith.negf %52 : vector<2x32xf32>
    %54 = math.exp %53 : vector<2x32xf32>
    %cst_25 = arith.constant 1.000000e+00 : f32
    %55 = vector.broadcast %cst_25 : f32 to vector<2x32xf32>
    %56 = arith.addf %55, %54 : vector<2x32xf32>
    %57 = arith.divf %55, %56 : vector<2x32xf32>
    %58 = vector.extract_strided_slice %45 {offsets = [0, 32], sizes = [2, 32], strides = [1, 1]} : vector<2x96xf32> to vector<2x32xf32>
    %59 = vector.extract_strided_slice %49 {offsets = [0, 32], sizes = [2, 32], strides = [1, 1]} : vector<2x96xf32> to vector<2x32xf32>
    %60 = arith.addf %58, %59 : vector<2x32xf32>
    %61 = arith.negf %60 : vector<2x32xf32>
    %62 = math.exp %61 : vector<2x32xf32>
    %cst_26 = arith.constant 1.000000e+00 : f32
    %63 = vector.broadcast %cst_26 : f32 to vector<2x32xf32>
    %64 = arith.addf %63, %62 : vector<2x32xf32>
    %65 = arith.divf %63, %64 : vector<2x32xf32>
    %66 = vector.extract_strided_slice %45 {offsets = [0, 64], sizes = [2, 32], strides = [1, 1]} : vector<2x96xf32> to vector<2x32xf32>
    %67 = vector.extract_strided_slice %49 {offsets = [0, 64], sizes = [2, 32], strides = [1, 1]} : vector<2x96xf32> to vector<2x32xf32>
    %68 = arith.mulf %57, %67 : vector<2x32xf32>
    %69 = arith.addf %66, %68 : vector<2x32xf32>
    %70 = math.tanh %69 : vector<2x32xf32>
    %cst_27 = arith.constant 1.000000e+00 : f32
    %71 = vector.broadcast %cst_27 : f32 to vector<2x32xf32>
    %72 = arith.subf %71, %65 : vector<2x32xf32>
    %73 = arith.mulf %72, %70 : vector<2x32xf32>
    %74 = arith.mulf %65, %1 : vector<2x32xf32>
    %75 = arith.addf %73, %74 : vector<2x32xf32>
    %c0_28 = arith.constant 0 : index
    %c0_29 = arith.constant 0 : index
    %76 = vector.load %arg9[%c0_28, %c0_29] : memref<2x32xf32, #tpu.memory_space<vmem>>, vector<2x32xf32>
    tpu.vector_store %arg9[%c0_28, %c0_29], %75 {strides = array<i32>} : memref<2x32xf32, #tpu.memory_space<vmem>>, vector<2x32xf32>,
    %c0_30 = arith.constant 0 : index
    %c0_31 = arith.constant 0 : index
    %77 = vector.load %arg6[%c0_30, %c0_31] : memref<32x40xf32, #tpu.memory_space<vmem>>, vector<32x40xf32>
    %cst_32 = arith.constant dense<0.000000e+00> : vector<2x40xf32>
    %78 = tpu.matmul %75, %77, %cst_32 {dimension_numbers = #tpu.dot_dimension_numbers<[1], [0], [0], [1], [0, 0, 1, 1], [], []>} : vector<2x32xf32>, vector<32x40xf32>, vector<2x40xf32> -> vector<2x40xf32>
    %79 = vector.broadcast %7 : vector<1x40xf32> to vector<2x40xf32>
    %80 = arith.addf %78, %79 : vector<2x40xf32>
    %c0_33 = arith.constant 0 : index
    %c0_34 = arith.constant 0 : index
    %81 = vector.load %arg8[%c0_33, %c0_34] : memref<2x40xf32, #tpu.memory_space<vmem>>, vector<2x40xf32>
    tpu.vector_store %arg8[%c0_33, %c0_34], %80 {strides = array<i32>} : memref<2x40xf32, #tpu.memory_space<vmem>>, vector<2x40xf32>,
    return
  }
}

</mosaic_0001>

<bundles_post_ra>
// kernel: tpu_custom_call.1
= control target key start
LH: loop header
LB: loop body
LE: loop exit
PB: predicated region body
PF: predicated region fallthrough
CT: control target
= control target key end

     0   :  { %16 = vsyncpa [#allocation3], 0  ;;  %s1614_s0 = inlined_call_operand.vmem [shape: f32[2,32], index: 0, kind: input, shape index: {}]   ;;  %s1615_s1 = inlined_call_operand.hbm [shape: f32[2,32], index: 1, kind: input, shape index: {}]   ;;  %s1616_s2 = inlined_call_operand.vmem [shape: f32[2,32,64], index: 2, kind: input, shape index: {}]   ;;  %s1617_s3 = inlined_call_operand.hbm [shape: f32[64,64], index: 3, kind: input, shape index: {}]   ;;  %s1618_s4 = inlined_call_operand.vmem [shape: f32[64,32], index: 4, kind: input, shape index: {}]   ;;  %s1619_s5 = inlined_call_operand.hbm [shape: f32[64,96], index: 5, kind: input, shape index: {}]   ;;  %s1620_s6 = inlined_call_operand.vmem [shape: f32[32,40], index: 6, kind: input, shape index: {}]   ;;  %s1621_s7 = inlined_call_operand.vmem [shape: f32[8,128], index: 7, kind: input, shape index: {}]   ;;  %s1622_s8 = inlined_call_operand.hbm [shape: f32[2,40], index: 8, kind: output, shape index: {0}]   ;;  %s1623_s9 = inlined_call_operand.hbm [shape: f32[2,32], index: 9, kind: output, shape index: {1}]   ;;  %s1624_s10 = inlined_call_operand.hbm [shape: f32[2,64], index: 10, kind: output, shape index: {2}]  }
   0x1   :  { %17 = vsyncpa [#allocation6], 0 }
   0x2   :  { %18 = vsyncpa [#allocation4], 0 }
   0x3   :  { %19 = vsyncpa [#allocation10], 0  ;;  %s1314_s13 = smov [#allocation5]   ;;  %s1174_s17 = scalar_lea.hbm %s1617_s3, 1024 }
   0x4   :  { %s39_s14 = sshll.u32 %s1314_s13, 4  ;;  %p1175_p0 = scmp.ne.s32.totalorder %s1617_s3, %s1174_s17  ;;  %s40_s14 = int_to_ptr.vmem [resolvable:$true] %s39_s14 }
   0x5   :  { %p1178_p1 = scmp.lt.u32.totalorder %s1174_s17, %s1617_s3 }
   0x7   :  { %p1180_p2 = pnand %p1178_p1, %p1175_p0 }
   0x9   :  { %1183 = shalt.err (!%p1180_p2)
}
   0xa   :  { %s1184_s22 = scalar_lea.vmem %s40_s14, 1024  ;;  %p1189_p4 = scmp.lt.s32.totalorder %s40_s14, %s40_s14 }
   0xb   :  { %p1185_p3 = scmp.ne.s32.totalorder %s40_s14, %s1184_s22  ;;  %p1190_p5 = scmp.lt.s32.totalorder %s1184_s22, %s1184_s22 }
   0xd   :  { %p1191_p6 = por %p1190_p5, %p1189_p4 }
   0xf   :  { %p1192_p7 = pnand %p1191_p6, %p1185_p3 }
  0x11   :  { %1195 = shalt.err (!%p1192_p7)
}
  0x12   :  { %s1315_s23 = smov 128   ;;  %s1316_s24 = smov 8  }
  0x13   :  { %45 = dma.hbm_to_vmem [thread:$0]  %s1617_s3, 1024, %s40_s14, [#allocation6], %s1315_s23, %s1315_s23, %s1316_s24  }
  0x14   :  { %s1317_s27 = smov [#allocation2]   ;;  %s1318_s29 = smov [#allocation7]  }
  0x15   :  { %s28_s28 = sshll.u32 %s1317_s27, 4  ;;  %s53_s30 = sshll.u32 %s1318_s29, 4  ;;  %s29_s28 = int_to_ptr.vmem [resolvable:$true] %s28_s28  ;;  %s54_s30 = int_to_ptr.vmem [resolvable:$true] %s53_s30 }
  0x16   :  { %s1196_s13 = scalar_lea.hbm %s1615_s1, 32 }
  0x17   :  { %p1197_p8 = scmp.ne.s32.totalorder %s1615_s1, %s1196_s13  ;;  %p1200_p9 = scmp.lt.u32.totalorder %s1196_s13, %s1615_s1 }
  0x19   :  { %p1202_p10 = pnand %p1200_p9, %p1197_p8 }
  0x1b   :  { %1205 = shalt.err (!%p1202_p10)
}
  0x1c   :  { %s1206_s3 = scalar_lea.vmem %s29_s28, 32  ;;  %p1211_p12 = scmp.lt.s32.totalorder %s29_s28, %s29_s28 }
  0x1d   :  { %p1207_p11 = scmp.ne.s32.totalorder %s29_s28, %s1206_s3  ;;  %p1212_p13 = scmp.lt.s32.totalorder %s1206_s3, %s1206_s3 }
  0x1f   :  { %p1213_p0 = por %p1212_p13, %p1211_p12 }
  0x21   :  { %p1214_p1 = pnand %p1213_p0, %p1207_p11 }
  0x23   :  { %1217 = shalt.err (!%p1214_p1)
}
  0x24   :  { %31 = dma.hbm_to_vmem [thread:$0]  %s1615_s1, 32, %s29_s28, [#allocation3]  }
  0x25   :  { %s1218_s22 = scalar_lea.hbm %s1619_s5, 1024 }
  0x26   :  { %p1219_p2 = scmp.ne.s32.totalorder %s1619_s5, %s1218_s22  ;;  %p1222_p3 = scmp.lt.u32.totalorder %s1218_s22, %s1619_s5 }
  0x28   :  { %p1224_p4 = pnand %p1222_p3, %p1219_p2 }
  0x2a   :  { %1227 = shalt.err (!%p1224_p4)
}
  0x2b   :  { %s1228_s11 = scalar_lea.vmem %s54_s30, 1024  ;;  %p1233_p6 = scmp.lt.s32.totalorder %s54_s30, %s54_s30 }
  0x2c   :  { %p1229_p5 = scmp.ne.s32.totalorder %s54_s30, %s1228_s11  ;;  %p1234_p7 = scmp.lt.s32.totalorder %s1228_s11, %s1228_s11 }
  0x2e   :  { %p1235_p8 = por %p1234_p7, %p1233_p6 }
  0x30   :  { %p1236_p9 = pnand %p1235_p8, %p1229_p5 }
  0x32   :  { %1239 = shalt.err (!%p1236_p9)
}
  0x33   :  { %59 = dma.hbm_to_vmem [thread:$0]  %s1619_s5, 1024, %s54_s30, [#allocation6], %s1315_s23, %s1315_s23, %s1316_s24  }
  0x34   :  { %1306 = dma.done.wait [#allocation3], 32  }
  0x35   :  { %1307 = vsyncadd [#allocation3], 4294967264 }
  0x36   :  { %1308 = dma.done.wait [#allocation6], 2048  }
  0x37   :  { %1309 = vsyncadd [#allocation6], 4294965248  ;;  %v1319_v0 = vmov 0.0|0.0   ;;  %vm1320_vm0 = vmmov 0   ;;  %v1321_v1 = vmov 0.0   ;;  %v80_v2 = vld [vmem:[#allocation5 + $0x20] sm:$0xff]  ;;  %v231_v16 = vlaneseq }
  0x38   :  { %1091 = vmatprep.subr.bf16.mxu0 %v1319_v0  ;;  %1097 = vmatprep.subr.bf16.mxu1 %v1319_v0  ;;  %v81_v3 = vld [vmem:[#allocation5 + $0x28] sm:$0xff]  ;;  %v76_v4 = vld [vmem:[#allocation5] sm:$0xff]  ;;  %v82_v7 = vld [vmem:[#allocation5 + $0x30] sm:$0xff]  ;;  %vm84_vm1 = vcmask 261120   ;;  %vm236_vm2 = vcmask 517120   ;;  %vm280_vm3 = vcmask 523264  }
  0x39   :  { %1000 = vmatprep.mubr.msk.f32.mxu0 %vm1320_vm0, %v1321_v1  ;;  %1011 = vmatprep.mubr.msk.f32.mxu1 %vm1320_vm0, %v1321_v1  ;;  %v1092_v5 = vpack.c.bf16 %v81_v3, %v80_v2  ;;  %v77_v6 = vld [vmem:[#allocation5 + $0x8] sm:$0xff]  ;;  %v83_v8 = vld [vmem:[#allocation5 + $0x38] sm:$0xff]  ;;  %v78_v10 = vld [vmem:[#allocation5 + $0x10] sm:$0xff]  ;;  %v1451_v17 = vshrl.u32 %v231_v16, 7  ;;  %v1322_v47 = vmov 1966171168  }
  0x3a   :  { %v1098_v9 = vpack.c.bf16 %v77_v6, %v76_v4  ;;  %v79_v11 = vld [vmem:[#allocation5 + $0x18] sm:$0xff]  ;;  %v1095_v12 = vpack.c.bf16 %v83_v8, %v82_v7  ;;  %v273_v34 = vld [vmem:[%s1616_s2 + $0x8] sm:$0xff]  ;;  %vm1470_vm4 = vmpackc.low %vm280_vm3, %vm280_vm3  ;;  %v251_v48 = vunpack.c.l.s4 %v1322_v47  ;;  %vm460_vm5 = vcmask 1041409   ;;  %s1324_s17 = smov 32   ;;  %s1325_s26 = smov 96  }
  0x3b   :  { %1093 = vmatpush3.bf16.msra.mxu0 %v1092_v5  ;;  %v1101_v13 = vpack.c.bf16 %v79_v11, %v78_v10  ;;  %v1434_v14 = vld [vmem:[#allocation2] sm:$0x3]  ;;  %v233_v18 = vsub.s32 0, %v1451_v17  ;;  %v277_v38 = vld [vmem:[%s1616_s2 + $0x28] sm:$0xff]  ;;  %v274_v40 = vld [vmem:[%s1616_s2 + $0x10] sm:$0xff]  ;;  %vm802_vm6 = vcmask 254976  }
  0x3c   :  { %1099 = vmatpush3.bf16.msra.mxu1 %v1098_v9  ;;  %1094 = vmatprep.subr.bf16.mxu0 %v1319_v0  ;;  %v1439_v15 = vld [vmem:[%s1614_s0] sm:$0x3]  ;;  %v275_v41 = vld [vmem:[%s1616_s2 + $0x18] sm:$0xff]  ;;  %v278_v43 = vld [vmem:[%s1616_s2 + $0x30] sm:$0xff]  ;;  %v252_v49 = vunpack.c.0.s8 %v251_v48 }
  0x3d   :  { %1100 = vmatprep.subr.bf16.mxu1 %v1319_v0  ;;  %v1457_v19 = vld [vmem:[%s1621_s7] sm:$0xff]  ;;  %v1108_v42 = vpack.c.bf16 %v275_v41, %v274_v40  ;;  %v279_v44 = vld [vmem:[%s1616_s2 + $0x38] sm:$0xff]  ;;  %v454_v54 = vld [vmem:[%s1618_s4 + $0x28] sm:$0xff] }
  0x3e   :  { %v234_v21 = vrot.slane %v1457_v19, %v233_v18  ;;  %v272_v33 = vld [vmem:[%s1616_s2] sm:$0xff]  ;;  %v1116_v45 = vpack.c.bf16 %v279_v44, %v278_v43  ;;  %v255_v50 = vsub.s32 %v252_v49, %v1451_v17  ;;  %v450_v57 = vld [vmem:[%s1618_s4 + $0x8] sm:$0xff]  ;;  %v451_v63 = vld [vmem:[%s1618_s4 + $0x10] sm:$0xff] }
  0x3f   :  { %1096 = vmatpush3.bf16.msra.mxu0 %v1095_v12  ;;  %v1104_v35 = vpack.c.bf16 %v273_v34, %v272_v33  ;;  %v276_v37 = vld [vmem:[%s1616_s2 + $0x20] sm:$0xff]  ;;  %v452_v2 = vld [vmem:[%s1618_s4 + $0x18] sm:$0xff]  ;;  %v455_v4 = vld [vmem:[%s1618_s4 + $0x30] sm:$0xff] }
  0x40   :  { %1102 = vmatpush3.bf16.msra.mxu1 %v1101_v13  ;;  %1103 = vmatprep.subr.bf16.mxu0 %v1319_v0  ;;  %v1112_v39 = vpack.c.bf16 %v277_v38, %v276_v37  ;;  %v453_v53 = vld [vmem:[%s1618_s4 + $0x20] sm:$0xff]  ;;  %v1129_v3 = vpack.c.bf16 %v452_v2, %v451_v63  ;;  %v456_v5 = vld [vmem:[%s1618_s4 + $0x38] sm:$0xff]  ;;  %v615_v8 = vld [vmem:[#allocation7 + $0x28] sm:$0xff] }
  0x41   :  { %1111 = vmatprep.subr.bf16.mxu1 %v1319_v0  ;;  %v449_v56 = vld [vmem:[%s1618_s4] sm:$0xff]  ;;  %v1120_v58 = vpack.c.bf16 %v454_v54, %v453_v53  ;;  %v1123_v6 = vpack.c.bf16 %v456_v5, %v455_v4  ;;  %v616_v9 = vld [vmem:[#allocation7 + $0x30] sm:$0xff]  ;;  %s1323_s4 = smov 64  }
  0x42   :  { %1001 = vmatmul.mubr.msk.f32.vlgmr.msra.gmra.mrb[0].mxu0 %vm84_vm1, %v1434_v14  ;;  %v1126_v61 = vpack.c.bf16 %v450_v57, %v449_v56  ;;  %v614_v7 = vld [vmem:[#allocation7 + $0x20] sm:$0xff]  ;;  %v617_v11 = vld [vmem:[#allocation7 + $0x38] sm:$0xff]  ;;  %v806_v57 = vld [vmem:[%s1620_s6 + $0x10] sm:$0xff] }
  0x43   :  { %1012 = vmatmul.mubr.msk.f32.vlgmr.msra.gmra.mrb[0].mxu1 %vm84_vm1, %v1439_v15  ;;  %1022 = vmatprep.mubr.msk.f32.mxu0 %vm1320_vm0, %v1321_v1  ;;  %v1138_v10 = vpack.c.bf16 %v615_v8, %v614_v7  ;;  %v1141_v12 = vpack.c.bf16 %v617_v11, %v616_v9  ;;  %v805_v56 = vld [vmem:[%s1620_s6 + $0x8] sm:$0xff] }
  0x44   :  { %1033 = vmatprep.mubr.msk.f32.mxu1 %vm1320_vm0, %v1321_v1 }
  0x48   :  { %1106 = vmatpush3.bf16.xpose.msk.msra.mxu0 %vm1470_vm4, %v1104_v35  ;;  %v606_v35 = vsub.s32 1, %v1451_v17 }
  0x49   :  { %1107 = vmatprep.subr.bf16.mxu0 %v1319_v0  ;;  %1114 = vmatpush3.bf16.xpose.msk.msra.mxu1 %vm1470_vm4, %v1112_v39 }
  0x4a   :  { %1115 = vmatprep.subr.bf16.mxu1 %v1319_v0  ;;  %v607_v36 = vrot.slane %v1457_v19, %v606_v35 }
  0x50   :  { %1110 = vmatpush3.bf16.xpose.msk.msra.mxu0 %vm1470_vm4, %v1108_v42  ;;  %v620_v42 = vsub.s32 2, %v1451_v17 }
  0x51   :  { %1119 = vmatprep.subr.bf16.mxu0 %v1319_v0  ;;  %1118 = vmatpush3.bf16.xpose.msk.msra.mxu1 %vm1470_vm4, %v1116_v45 }
  0x52   :  { %1125 = vmatprep.subr.bf16.mxu1 %v1319_v0  ;;  %v621_v43 = vrot.slane %v1457_v19, %v620_v42 }
 0x115   :  { %v154_v20 = vpop.f32.mrb[0].mxu0 }
 0x116   :  { %v227_v22 = vpop.f32.mrb[0].mxu1  ;;  %v1002_v23 = vpop.f32.mrb[1].mxu0 }
 0x117   :  { %v228_v24 = vadd.f32 %v227_v22, %v154_v20  ;;  %v1013_v25 = vpop.f32.mrb[1].mxu1  ;;  %v610_v22 = vld [vmem:[#allocation7] sm:$0xff]  ;;  %v611_v23 = vld [vmem:[#allocation7 + $0x8] sm:$0xff] }
 0x119   :  { %v235_v26 = vadd.f32 %v234_v21, %v228_v24  ;;  %v1132_v24 = vpack.c.bf16 %v611_v23, %v610_v22 }
 0x11b   :  { %v237_v27 = vsel %vm236_vm2, %v235_v26, -inf }
 0x11c   :  { %238 = vmax.xlane.f32.xlu0 %v237_v27  ;;  %v612_v27 = vld [vmem:[#allocation7 + $0x10] sm:$0xff] }
 0x1a9   :  { %v239_v28 = vpop.xlane.xlu0 %238 }
 0x1aa   :  { %v240_v29 = vsub.f32 %v235_v26, %v239_v28  ;;  %v613_v28 = vld [vmem:[#allocation7 + $0x18] sm:$0xff] }
 0x1ac   :  { %v241_v30 = vmul.f32 1.442695, %v240_v29  ;;  %v1135_v29 = vpack.c.bf16 %v613_v28, %v612_v27 }
 0x1ae   :  { %1164 = vpow2.f32 %v241_v30  ;;  %v697_v30 = vsub.s32 3, %v1451_v17 }
 0x1b8   :  { %v1165_v31 = vpop.eup %1164 }
 0x1b9   :  { %v243_v32 = vsel %vm236_vm2, %v1165_v31, 0.0 }
 0x1ba   :  { %244 = vadd.xlane.f32.xlu0 %v243_v32 }
 0x247   :  { %v245_v46 = vpop.xlane.xlu0 %244 }
 0x248   :  { %1166 = vrcp.f32 %v245_v46 }
 0x252   :  { %v1167_v51 = vpop.eup %1166 }
 0x253   :  { %v247_v52 = vmul.f32 %v1167_v51, %v1165_v31  ;;  %v698_v31 = vrot.slane %v1457_v19, %v697_v30 }
 0x255   :  { %v256_v55 = vrot.slane %v247_v52, %v255_v50  ;;  %248 = vst.msk [vmem:[#allocation11] sm:$0x3] %vm236_vm2, %v247_v52 }
 0x257   :  { %v264_v59 = vrot.slane %v256_v55, %v255_v50  ;;  %v257_v60 = vcombine.high %v256_v55, %v256_v55  ;;  %v804_v55 = vld [vmem:[%s1620_s6] sm:$0xff] }
 0x259   :  { %1023 = vmatmul.mubr.msk.f32.vlgmr.msra.gmra.mrb[2].mxu0 %vm280_vm3, %v264_v59  ;;  %v271_v62 = vrot.slane %v257_v60, %v255_v50 }
 0x25a   :  { %1121 = vmatpush3.bf16.msra.mxu0 %v1120_v58  ;;  %1044 = vmatprep.mubr.msk.f32.mxu0 %vm1320_vm0, %v1321_v1  ;;  %v1144_v58 = vpack.c.bf16 %v805_v56, %v804_v55 }
 0x25b   :  { %1034 = vmatmul.mubr.msk.f32.vlgmr.msra.gmra.mrb[2].mxu1 %vm280_vm3, %v271_v62  ;;  %1122 = vmatprep.subr.bf16.mxu0 %v1319_v0 }
 0x25c   :  { %1127 = vmatpush3.bf16.msra.mxu1 %v1126_v61  ;;  %1055 = vmatprep.mubr.msk.f32.mxu1 %vm1320_vm0, %v1321_v1 }
 0x25d   :  { %1128 = vmatprep.subr.bf16.mxu1 %v1319_v0 }
 0x25e   :  { %1124 = vmatpush3.bf16.msra.mxu0 %v1123_v6 }
 0x25f   :  { %1131 = vmatprep.subr.bf16.mxu0 %v1319_v0 }
 0x260   :  { %1130 = vmatpush3.bf16.msra.mxu1 %v1129_v3 }
 0x261   :  { %1137 = vmatprep.subr.bf16.mxu1 %v1319_v0 }
 0x263   :  { %1056 = vmatmul.mubr.msk.f32.vlgmr.msra.gmra.mrb[4].mxu1 %vm84_vm1, %v1439_v15 }
 0x264   :  { %1077 = vmatprep.mubr.msk.f32.mxu1 %vm1320_vm0, %v1321_v1  ;;  %1139 = vmatpush3.bf16.msra.mxu1 %v1138_v10 }
 0x265   :  { %1140 = vmatprep.subr.bf16.mxu1 %v1319_v0 }
 0x268   :  { %1142 = vmatpush3.bf16.msra.mxu1 %v1141_v12 }
 0x26b   :  { %1078 = vmatmul.mubr.msk.f32.vlgmr.msra.gmra.mrb[6].mxu1 %vm84_vm1, %v1434_v14 }
 0x32c   :  { %v361_v13 = vpop.f32.mrb[2].mxu0 }
 0x32d   :  { %v1024_v16 = vpop.f32.mrb[3].mxu0 }
 0x32e   :  { %v445_v18 = vpop.f32.mrb[2].mxu1 }
 0x32f   :  { %v459_v15 = vrot.slane %v445_v18, 7  ;;  %v1035_v20 = vpop.f32.mrb[3].mxu1 }
 0x331   :  { %v461_v21 = vsel %vm460_vm5, %v459_v15, %v361_v13 }
 0x332   :  { %1045 = vmatmul.mubr.msk.f32.vlgmr.msra.gmra.mrb[4].mxu0 %vm84_vm1, %v461_v21 }
 0x333   :  { %1066 = vmatprep.mubr.msk.f32.mxu0 %vm1320_vm0, %v1321_v1  ;;  %1133 = vmatpush3.bf16.msra.mxu0 %v1132_v24 }
 0x334   :  { %1134 = vmatprep.subr.bf16.mxu0 %v1319_v0 }
 0x336   :  { %v600_v25 = vpop.f32.mrb[4].mxu1 }
 0x337   :  { %v1057_v26 = vpop.f32.mrb[5].mxu1  ;;  %1136 = vmatpush3.bf16.msra.mxu0 %v1135_v29 }
 0x338   :  { %1143 = vmatprep.subr.bf16.mxu0 %v1319_v0 }
 0x33e   :  { %v765_v32 = vpop.f32.mrb[6].mxu1 }
 0x33f   :  { %v766_v33 = vadd.f32 %v765_v32, %v698_v31  ;;  %v1079_v34 = vpop.f32.mrb[7].mxu1 }
 0x341   :  { %777 = vrot.lane.b32.xlu1 %v766_v33, %s1323_s4 }
 0x3b3   :  { %v778_v51 = vpop.permute.xlu1 %777 }
 0x405   :  { %v530_v37 = vpop.f32.mrb[4].mxu0 }
 0x406   :  { %v601_v38 = vadd.f32 %v600_v25, %v530_v37  ;;  %v1046_v39 = vpop.f32.mrb[5].mxu0 }
 0x408   :  { %v608_v40 = vadd.f32 %v607_v36, %v601_v38 }
 0x40a   :  { %v609_v41 = vmax.f32 %v608_v40, 0.0 }
 0x40c   :  { %1067 = vmatmul.mubr.msk.f32.vlgmr.msra.gmra.mrb[6].mxu0 %vm84_vm1, %v609_v41 }
 0x40d   :  { %1088 = vmatprep.mubr.msk.f32.mxu0 %vm1320_vm0, %v1321_v1  ;;  %1145 = vmatpush3.bf16.msra.mxu0 %v1144_v58 }
 0x40e   :  { %1146 = vmatprep.subr.bf16.mxu0 %v1319_v0 }
 0x4df   :  { %v691_v44 = vpop.f32.mrb[6].mxu0 }
 0x4e0   :  { %v692_v45 = vadd.f32 %v691_v44, %v621_v43  ;;  %v1068_v46 = vpop.f32.mrb[7].mxu0 }
 0x4e2   :  { %v769_v47 = vadd.f32 %v766_v33, %v692_v45 }
 0x4e4   :  { %v945_v48 = vmul.f32 -1.442695, %v769_v47 }
 0x4e6   :  { %1168 = vpow2.f32 %v945_v48 }
 0x4f0   :  { %v1169_v49 = vpop.eup %1168 }
 0x4f1   :  { %v773_v50 = vadd.f32 1.0, %v1169_v49 }
 0x4f3   :  { %1170 = vrcp.f32 %v773_v50 }
 0x4fd   :  { %v1171_v52 = vpop.eup %1170 }
 0x4fe   :  { %v780_v53 = vmul.f32 %v1171_v52, %v778_v51  ;;  %v787_v62 = vsub.f32 1.0, %v1171_v52 }
 0x500   :  { %782 = vrot.lane.b32.xlu1 %v780_v53, %s1323_s4 }
 0x504   :  { %793 = vrot.lane.b32.xlu1 %v1434_v14, %s1324_s17  ;;  %v807_v14 = vld [vmem:[%s1620_s6 + $0x18] sm:$0xff]  ;;  %s1326_s6 = smov [#allocation9]  }
 0x505   :  { %v1147_v59 = vpack.c.bf16 %v807_v14, %v806_v57  ;;  %s902_s2 = sshll.u32 %s1326_s6, 4  ;;  %s903_s2 = int_to_ptr.vmem [resolvable:$true] %s902_s2 }
 0x506   :  { %s1240_s27 = scalar_lea.vmem %s903_s2, 32  ;;  %p1245_p11 = scmp.lt.s32.totalorder %s903_s2, %s903_s2 }
 0x507   :  { %1148 = vmatpush3.bf16.msra.mxu0 %v1147_v59  ;;  %p1241_p10 = scmp.ne.s32.totalorder %s903_s2, %s1240_s27  ;;  %p1246_p12 = scmp.lt.s32.totalorder %s1240_s27, %s1240_s27 }
 0x509   :  { %p1247_p13 = por %p1246_p12, %p1245_p11 }
 0x50b   :  { %p1248_p0 = pnand %p1247_p13, %p1241_p10 }
 0x572   :  { %v783_v1 = vpop.permute.xlu1 %782 }
 0x573   :  { %v785_v54 = vadd.f32 %v783_v1, %v692_v45 }
 0x575   :  { %1172 = vtanh.f32 %v785_v54 }
 0x576   :  { %v794_v61 = vpop.permute.xlu1 %793 }
 0x577   :  { %v796_v2 = vmul.f32 %v1171_v52, %v794_v61 }
 0x57f   :  { %v1173_v60 = vpop.eup %1172 }
 0x580   :  { %789 = vrot.lane.b32.xlu0 %v1173_v60, %s1325_s26 }
 0x5f2   :  { %v790_v63 = vpop.permute.xlu0 %789 }
 0x5f3   :  { %v792_v3 = vmul.f32 %v790_v63, %v787_v62 }
 0x5f5   :  { %v797_v4 = vadd.f32 %v796_v2, %v792_v3 }
 0x5f7   :  { %799 = vrot.lane.b32.xlu1 %v797_v4, %s1325_s26 }
 0x669   :  { %v800_v5 = vpop.permute.xlu1 %799 }
 0x66a   :  { %1089 = vmatmul.mubr.msk.f32.vlgmr.msra.gmra.mrb[8].mxu0 %vm84_vm1, %v800_v5  ;;  %803 = vst.msk [vmem:[#allocation9] sm:$0x3] %vm802_vm6, %v800_v5 }
 0x66b   :  { %1251 = shalt.err (!%p1248_p0)
}
 0x66c   :  { %s1252_s1 = scalar_lea.hbm %s1623_s9, 32 }
 0x66d   :  { %p1253_p1 = scmp.ne.s32.totalorder %s1623_s9, %s1252_s1  ;;  %p1256_p2 = scmp.lt.u32.totalorder %s1252_s1, %s1623_s9 }
 0x66f   :  { %p1258_p3 = pnand %p1256_p2, %p1253_p1 }
 0x671   :  { %1261 = shalt.err (!%p1258_p3)
}
 0x672   :  { %905 = dma.vmem_to_hbm [thread:$0]  %s903_s2, 32, %s1623_s9, [#allocation10]  }
 0x673   :  { %s1327_s30 = smov [#allocation11]  }
 0x674   :  { %s912_s12 = sshll.u32 %s1327_s30, 4  ;;  %s913_s12 = int_to_ptr.vmem [resolvable:$true] %s912_s12 }
 0x675   :  { %s1262_s13 = scalar_lea.vmem %s913_s12, 32  ;;  %p1267_p5 = scmp.lt.s32.totalorder %s913_s12, %s913_s12 }
 0x676   :  { %p1263_p4 = scmp.ne.s32.totalorder %s913_s12, %s1262_s13  ;;  %p1268_p6 = scmp.lt.s32.totalorder %s1262_s13, %s1262_s13 }
 0x678   :  { %p1269_p7 = por %p1268_p6, %p1267_p5 }
 0x67a   :  { %p1270_p8 = pnand %p1269_p7, %p1263_p4 }
 0x67c   :  { %1273 = shalt.err (!%p1270_p8)
}
 0x67d   :  { %s1274_s4 = scalar_lea.hbm %s1624_s10, 32 }
 0x67e   :  { %p1275_p9 = scmp.ne.s32.totalorder %s1624_s10, %s1274_s4  ;;  %p1278_p10 = scmp.lt.u32.totalorder %s1274_s4, %s1624_s10 }
 0x680   :  { %p1280_p11 = pnand %p1278_p10, %p1275_p9 }
 0x682   :  { %1283 = shalt.err (!%p1280_p11)
}
 0x683   :  { %915 = dma.vmem_to_hbm [thread:$0]  %s913_s12, 32, %s1624_s10, [#allocation10]   ;;  %v810_v0 = vsub.s32 4, %v1451_v17  ;;  %vm884_vm7 = vcmask 320512  }
 0x684   :  { %s1328_s20 = smov [#allocation8]  }
 0x685   :  { %v811_v6 = vrot.slane %v1457_v19, %v810_v0  ;;  %s892_s21 = sshll.u32 %s1328_s20, 4  ;;  %s893_s21 = int_to_ptr.vmem [resolvable:$true] %s892_s21 }
 0x686   :  { %s1284_s22 = scalar_lea.vmem %s893_s21, 32  ;;  %p1289_p13 = scmp.lt.s32.totalorder %s893_s21, %s893_s21 }
 0x687   :  { %p1285_p12 = scmp.ne.s32.totalorder %s893_s21, %s1284_s22  ;;  %p1290_p0 = scmp.lt.s32.totalorder %s1284_s22, %s1284_s22 }
 0x689   :  { %p1291_p1 = por %p1290_p0, %p1289_p13 }
 0x68b   :  { %p1292_p2 = pnand %p1291_p1, %p1285_p12 }
 0x73d   :  { %v880_v7 = vpop.f32.mrb[8].mxu0 }
 0x73e   :  { %v881_v8 = vadd.f32 %v880_v7, %v811_v6  ;;  %v1090_v9 = vpop.f32.mrb[9].mxu0 }
 0x740   :  { %885 = vst.msk [vmem:[#allocation8] sm:$0x3] %vm884_vm7, %v881_v8 }
 0x741   :  { %1295 = shalt.err (!%p1292_p2)
}
 0x742   :  { %s1296_s26 = scalar_lea.hbm %s1622_s8, 32 }
 0x743   :  { %p1297_p3 = scmp.ne.s32.totalorder %s1622_s8, %s1296_s26  ;;  %p1300_p4 = scmp.lt.u32.totalorder %s1296_s26, %s1622_s8 }
 0x745   :  { %p1302_p5 = pnand %p1300_p4, %p1297_p3 }
 0x747   :  { %1305 = shalt.err (!%p1302_p5)
}
 0x748   :  { %895 = dma.vmem_to_hbm [thread:$0]  %s893_s21, 32, %s1622_s8, [#allocation4]  }
 0x749   :  { %1310 = dma.done.wait [#allocation4], 32  }
 0x74a   :  { %1311 = vsyncadd [#allocation4], 4294967264 }
 0x74b   :  { %1312 = dma.done.wait [#allocation10], 64  }
 0x74c   :  { %1313 = vsyncadd [#allocation10], 4294967232 }
 0x74d   :  { %925 = vsyncpa [#allocation3], 1 }
 0x74e   :  { %926 = vsyncpa [#allocation6], 1 }
 0x74f   :  { %927 = vsyncpa [#allocation4], 1 }
 0x750   :  { %928 = vsyncpa [#allocation10], 1 }

</bundles_post_ra>
